<compile_context>
chip_gen: v5e
topology: v5e:2x2
jax: 0.10.0
libtpu: 0.0.40
codegen_flags: <defaults>
</compile_context>

<pallas_src>
import functools

import jax
import jax.numpy as jnp
import numpy as np
from jax.experimental import pallas as pl
from jax.experimental.pallas import tpu as pltpu


def _channel_mlp_kernel(x_ref, w1_ref, b1_ref, w2_ref, b2_ref, o_ref,
                        *, inner_l, mxu_dtype, vpu_first, vpu_second):
    """Fused Linear(F->D) -> ReLU -> Linear(D->F) on one (1, F, TL) tile.

    x_ref : (1, F, TL)  tile of the (B, F, L) input (L on the lane axis)
    w1_ref: (D, F)      first linear weight, PyTorch (out, in) layout
    b1_ref: (D, 1)
    w2_ref: (F, D)      second linear weight, PyTorch (out, in) layout
    b2_ref: (F, 1)
    o_ref : (1, F, TL)
    """
    _, F, TL = x_ref.shape
    D = w1_ref.shape[0]

    w1 = w1_ref[...]                                  # (D, F), resident
    w2 = w2_ref[...]                                  # (F, D), resident
    b1 = b1_ref[...].astype(jnp.float32)              # (D, 1)
    b2 = b2_ref[...].astype(jnp.float32)              # (F, 1)
    w1f = w1.astype(jnp.float32)
    w2f = w2.astype(jnp.float32)
    w1m = w1.astype(mxu_dtype)
    w2m = w2.astype(mxu_dtype)

    # Static lane sub-chunks: keep the f32 intermediate h small (vreg/VMEM
    # friendly) while the HBM<->VMEM tile stays large.
    chunks = []
    off = 0
    while off < TL:
        sz = min(inner_l, TL - off)
        chunks.append((off, sz))
        off += sz

    for start, size in chunks:
        xc = x_ref[0, :, start:start + size]          # (F, size)

        # ---- Linear(F -> D) -------------------------------------------------
        if vpu_first:
            # F is tiny: an MXU matmul with K=F would be <= F/256 utilized, so
            # do F broadcast multiply-accumulates on the VPU instead.
            xf = xc.astype(jnp.float32)
            h = jnp.zeros((D, size), jnp.float32)
            for f in range(F):
                h = h + w1f[:, f:f + 1] * xf[f:f + 1, :]
            h = h + b1
        else:
            h = jnp.dot(w1m, xc.astype(mxu_dtype),
                        preferred_element_type=jnp.float32) + b1
        h = jnp.maximum(h, 0.0)                       # ReLU

        # ---- Linear(D -> F) -------------------------------------------------
        if vpu_second:
            y = jnp.zeros((F, size), jnp.float32)
            for d in range(D):
                y = y + w2f[:, d:d + 1] * h[d:d + 1, :]
            y = y + b2
        else:
            y = jnp.dot(w2m, h.astype(mxu_dtype),
                        preferred_element_type=jnp.float32) + b2

        # Dropout(0.1) is identity at inference.
        o_ref[0, :, start:start + size] = y.astype(o_ref.dtype)


def _vmem_budget_bytes():
    """~75% of per-core VMEM: ~48 MiB on v7x (64 MiB), ~96 MiB on v5e/v6e (128 MiB)."""
    capacity = 64 << 20   # conservative fallback (v7x per-TC)
    try:
        info = pltpu.get_tpu_info()
        cap = getattr(info, "vmem_capacity_bytes", 0)
        if cap:
            capacity = int(cap)
    except Exception:
        pass
    return max(24 << 20, (capacity * 3) // 4)


def _select_tile_l(B, F, D, L, in_item, out_item, budget, inner_l, max_tile_l):
    """Largest lane tile that fits the VMEM budget (tl = L if possible)."""
    per_lane = 2 * F * in_item + 2 * F * out_item        # double-buffered x / out tiles
    fixed = 2 * D * F * 4 + (D + F) * 4                  # resident weights + biases (1x)
    fixed += (D + F) * inner_l * 4                       # f32 h / y sub-chunk
    avail = max(budget - fixed - (4 << 20), per_lane * 128)
    tl_budget = max(128, (avail // per_lane) // 128 * 128)
    tl_cap = int(min(tl_budget, max_tile_l))
    tl = L if L <= tl_cap else tl_cap
    # Keep >= 2 parallel grid steps so both v7x TensorCores get work.
    if B == 1 and L > 256:
        half = ((L + 1) // 2 + 127) // 128 * 128
        if half < tl:
            tl = max(128, half)
    return tl


def encoder_forward(x, params, *, compute_dtype=None, out_dtype=None,
                    inner_l=512, max_tile_l=8192):
    """Pallas implementation of Encoder.forward (conv_layers empty, norm=None).

    x: (B, feature_dim, L) -- same NCL layout as the PyTorch module.
    compute_dtype: e.g. jnp.bfloat16 to feed bf16 MXU operands on v6e/v7x
                   (cast happens in-kernel; accumulation stays f32).
    out_dtype: optionally bf16 for bf16 end-to-end I/O; defaults to x.dtype.
    """
    w1, b1, w2, b2 = params["w1"], params["b1"], params["w2"], params["b2"]
    B, F, L = x.shape
    D = w1.shape[0]
    out_dtype = jnp.dtype(out_dtype) if out_dtype is not None else x.dtype
    mxu_dtype = jnp.dtype(compute_dtype) if compute_dtype is not None else x.dtype

    budget = _vmem_budget_bytes()
    tl = _select_tile_l(B, F, D, L, x.dtype.itemsize, out_dtype.itemsize,
                        budget, inner_l, max_tile_l)
    grid = (B, pl.cdiv(L, tl))   # ragged last L block handled by Pallas masking

    # Tiny F leaves the MXU nearly empty -> VPU paths.
    vpu_first = F <= 32
    vpu_second = F <= 32 and D <= 64

    kernel = functools.partial(
        _channel_mlp_kernel, inner_l=inner_l, mxu_dtype=mxu_dtype,
        vpu_first=vpu_first, vpu_second=vpu_second)

    flops = 4 * B * F * D * L
    bytes_accessed = (B * F * L * (x.dtype.itemsize + out_dtype.itemsize)
                      + 2 * F * D * w1.dtype.itemsize + (D + F) * 4)
    cost = pl.CostEstimate(flops=flops, transcendentals=0,
                           bytes_accessed=bytes_accessed)

    out = pl.pallas_call(
        kernel,
        out_shape=jax.ShapeDtypeStruct((B, F, L), out_dtype),
        grid_spec=pltpu.PrefetchScalarGridSpec(
            num_scalar_prefetch=0,
            grid=grid,
            in_specs=[
                pl.BlockSpec((1, F, tl), lambda b, l: (b, 0, l)),   # x tile
                pl.BlockSpec((D, F), lambda b, l: (0, 0)),          # w1 (resident)
                pl.BlockSpec((D, 1), lambda b, l: (0, 0)),          # b1
                pl.BlockSpec((F, D), lambda b, l: (0, 0)),          # w2 (resident)
                pl.BlockSpec((F, 1), lambda b, l: (0, 0)),          # b2
            ],
            out_specs=pl.BlockSpec((1, F, tl), lambda b, l: (b, 0, l)),
        ),
        compiler_params=pltpu.CompilerParams(
            dimension_semantics=("parallel", "parallel"),
            vmem_limit_bytes=int(budget),
        ),
        cost_estimate=cost,
    )(x, w1, b1, w2, b2)

    # TODO(synk): conv_layers / norm_layer are externally injected modules in the
    # PyTorch ctor; they are None/empty in this configuration, so nothing else runs.
    return out


def init_params(key, feature_dim, d_model, dtype=jnp.float32):
    """PyTorch nn.Linear-style init, weights kept in PyTorch (out, in) layout."""
    k1, k2, k3, k4 = jax.random.split(key, 4)
    lim1 = 1.0 / np.sqrt(feature_dim)   # fan_in of Linear(F->D)
    lim2 = 1.0 / np.sqrt(d_model)       # fan_in of Linear(D->F)
    return {
        "w1": jax.random.uniform(k1, (d_model, feature_dim), dtype, -lim1, lim1),
        "b1": jax.random.uniform(k2, (d_model, 1), dtype, -lim1, lim1),
        "w2": jax.random.uniform(k3, (feature_dim, d_model), dtype, -lim2, lim2),
        "b2": jax.random.uniform(k4, (feature_dim, 1), dtype, -lim2, lim2),
    }


def _reference_forward(x, params):
    """Plain-JAX reference of the same forward pass (mirrors the PyTorch code)."""
    xm = jnp.transpose(x, (0, 2, 1))                                   # (B, L, F)
    h = jnp.maximum(xm @ params["w1"].T + params["b1"][:, 0], 0.0)     # (B, L, D)
    y = h @ params["w2"].T + params["b2"][:, 0]                        # (B, L, F)
    return jnp.transpose(y, (0, 2, 1))                                 # (B, F, L)


if __name__ == "__main__":
    key = jax.random.PRNGKey(0)
    k_x, k_p, k_x2, k_p2 = jax.random.split(key, 4)

    # Test 1: small shapes consistent with the module; pure-VPU path, exact f32.
    B, feature_dim, L, d_model = 2, 8, 16, 32
    x = jax.random.normal(k_x, (B, feature_dim, L), dtype=jnp.float32)
    params = init_params(k_p, feature_dim, d_model)
    y = jax.block_until_ready(encoder_forward(x, params))
    assert y.shape == (B, feature_dim, L)
    np.testing.assert_allclose(np.asarray(y), np.asarray(_reference_forward(x, params)),
                               rtol=1e-5, atol=1e-5)

    # Test 2: ragged L (not a multiple of the 128-lane tile) with no wrapper
    # padding, and the MXU path for the D-contraction (D=256).
    B2, F2, L2, D2 = 2, 8, 300, 256
    x2 = jax.random.normal(k_x2, (B2, F2, L2), dtype=jnp.float32)
    params2 = init_params(k_p2, F2, D2)
    y2 = jax.block_until_ready(encoder_forward(x2, params2, max_tile_l=128))
    np.testing.assert_allclose(np.asarray(y2),
                               np.asarray(_reference_forward(x2, params2)),
                               rtol=2e-2, atol=2e-2)

    # Test 3: bf16 MXU operands (v6e/v7x), f32 accumulation, in-kernel cast.
    y3 = jax.block_until_ready(
        encoder_forward(x2, params2, compute_dtype=jnp.bfloat16, max_tile_l=128))
    np.testing.assert_allclose(np.asarray(y3),
                               np.asarray(_reference_forward(x2, params2)),
                               rtol=1e-1, atol=1e-1)

    print("KERNEL_OK")
</pallas_src>

<mosaic_0001>
module attributes {stable_mosaic.version = 11 : i64} {
  func.func @_channel_mlp_kernel(%arg0: i32, %arg1: i32, %arg2: memref<1x8x16xf32, #tpu.memory_space<vmem>>, %arg3: memref<32x8xf32, #tpu.memory_space<vmem>>, %arg4: memref<32x1xf32, #tpu.memory_space<vmem>>, %arg5: memref<8x32xf32, #tpu.memory_space<vmem>>, %arg6: memref<8x1xf32, #tpu.memory_space<vmem>>, %arg7: memref<1x8x16xf32, #tpu.memory_space<vmem>>) attributes {dimension_semantics = [#tpu.dimension_semantics<parallel>, #tpu.dimension_semantics<parallel>], iteration_bounds = array<i64: 2, 1>, scalar_prefetch = 0 : i64, scratch_operands = 0 : i64, tpu.core_type = #tpu.core_type<tc>, window_params = [{transform_indices = @transform_0, window_bounds = array<i64: 1, 8, 16>}, {pipeline_mode = #tpu.pipeline_mode<synchronous>, transform_indices = @transform_1, window_bounds = array<i64: 32, 8>}, {pipeline_mode = #tpu.pipeline_mode<synchronous>, transform_indices = @transform_2, window_bounds = array<i64: 32, 1>}, {pipeline_mode = #tpu.pipeline_mode<synchronous>, transform_indices = @transform_3, window_bounds = array<i64: 8, 32>}, {pipeline_mode = #tpu.pipeline_mode<synchronous>, transform_indices = @transform_4, window_bounds = array<i64: 8, 1>}, {transform_indices = @transform_5, window_bounds = array<i64: 1, 8, 16>}]} {
    %c0 = arith.constant 0 : index
    %c0_0 = arith.constant 0 : index
    %0 = vector.load %arg3[%c0, %c0_0] : memref<32x8xf32, #tpu.memory_space<vmem>>, vector<32x8xf32>
    %c0_1 = arith.constant 0 : index
    %c0_2 = arith.constant 0 : index
    %1 = vector.load %arg5[%c0_1, %c0_2] : memref<8x32xf32, #tpu.memory_space<vmem>>, vector<8x32xf32>
    %c0_3 = arith.constant 0 : index
    %c0_4 = arith.constant 0 : index
    %2 = vector.load %arg4[%c0_3, %c0_4] : memref<32x1xf32, #tpu.memory_space<vmem>>, vector<32x1xf32>
    %c0_5 = arith.constant 0 : index
    %c0_6 = arith.constant 0 : index
    %3 = vector.load %arg6[%c0_5, %c0_6] : memref<8x1xf32, #tpu.memory_space<vmem>>, vector<8x1xf32>
    %c0_7 = arith.constant 0 : index
    %c0_8 = arith.constant 0 : index
    %c0_9 = arith.constant 0 : index
    %4 = vector.load %arg2[%c0_7, %c0_8, %c0_9] : memref<1x8x16xf32, #tpu.memory_space<vmem>>, vector<1x8x16xf32>
    %5 = vector.shape_cast %4 : vector<1x8x16xf32> to vector<8x16xf32>
    %cst = arith.constant 0.000000e+00 : f32
    %6 = vector.broadcast %cst : f32 to vector<32x16xf32>
    %7 = vector.extract_strided_slice %0 {offsets = [0, 0], sizes = [32, 1], strides = [1, 1]} : vector<32x8xf32> to vector<32x1xf32>
    %8 = vector.extract_strided_slice %5 {offsets = [0, 0], sizes = [1, 16], strides = [1, 1]} : vector<8x16xf32> to vector<1x16xf32>
    %9 = vector.broadcast %7 : vector<32x1xf32> to vector<32x16xf32>
    %10 = vector.broadcast %8 : vector<1x16xf32> to vector<32x16xf32>
    %11 = arith.mulf %9, %10 : vector<32x16xf32>
    %12 = arith.addf %6, %11 : vector<32x16xf32>
    %13 = vector.extract_strided_slice %0 {offsets = [0, 1], sizes = [32, 1], strides = [1, 1]} : vector<32x8xf32> to vector<32x1xf32>
    %14 = vector.extract_strided_slice %5 {offsets = [1, 0], sizes = [1, 16], strides = [1, 1]} : vector<8x16xf32> to vector<1x16xf32>
    %15 = vector.broadcast %13 : vector<32x1xf32> to vector<32x16xf32>
    %16 = vector.broadcast %14 : vector<1x16xf32> to vector<32x16xf32>
    %17 = arith.mulf %15, %16 : vector<32x16xf32>
    %18 = arith.addf %12, %17 : vector<32x16xf32>
    %19 = vector.extract_strided_slice %0 {offsets = [0, 2], sizes = [32, 1], strides = [1, 1]} : vector<32x8xf32> to vector<32x1xf32>
    %20 = vector.extract_strided_slice %5 {offsets = [2, 0], sizes = [1, 16], strides = [1, 1]} : vector<8x16xf32> to vector<1x16xf32>
    %21 = vector.broadcast %19 : vector<32x1xf32> to vector<32x16xf32>
    %22 = vector.broadcast %20 : vector<1x16xf32> to vector<32x16xf32>
    %23 = arith.mulf %21, %22 : vector<32x16xf32>
    %24 = arith.addf %18, %23 : vector<32x16xf32>
    %25 = vector.extract_strided_slice %0 {offsets = [0, 3], sizes = [32, 1], strides = [1, 1]} : vector<32x8xf32> to vector<32x1xf32>
    %26 = vector.extract_strided_slice %5 {offsets = [3, 0], sizes = [1, 16], strides = [1, 1]} : vector<8x16xf32> to vector<1x16xf32>
    %27 = vector.broadcast %25 : vector<32x1xf32> to vector<32x16xf32>
    %28 = vector.broadcast %26 : vector<1x16xf32> to vector<32x16xf32>
    %29 = arith.mulf %27, %28 : vector<32x16xf32>
    %30 = arith.addf %24, %29 : vector<32x16xf32>
    %31 = vector.extract_strided_slice %0 {offsets = [0, 4], sizes = [32, 1], strides = [1, 1]} : vector<32x8xf32> to vector<32x1xf32>
    %32 = vector.extract_strided_slice %5 {offsets = [4, 0], sizes = [1, 16], strides = [1, 1]} : vector<8x16xf32> to vector<1x16xf32>
    %33 = vector.broadcast %31 : vector<32x1xf32> to vector<32x16xf32>
    %34 = vector.broadcast %32 : vector<1x16xf32> to vector<32x16xf32>
    %35 = arith.mulf %33, %34 : vector<32x16xf32>
    %36 = arith.addf %30, %35 : vector<32x16xf32>
    %37 = vector.extract_strided_slice %0 {offsets = [0, 5], sizes = [32, 1], strides = [1, 1]} : vector<32x8xf32> to vector<32x1xf32>
    %38 = vector.extract_strided_slice %5 {offsets = [5, 0], sizes = [1, 16], strides = [1, 1]} : vector<8x16xf32> to vector<1x16xf32>
    %39 = vector.broadcast %37 : vector<32x1xf32> to vector<32x16xf32>
    %40 = vector.broadcast %38 : vector<1x16xf32> to vector<32x16xf32>
    %41 = arith.mulf %39, %40 : vector<32x16xf32>
    %42 = arith.addf %36, %41 : vector<32x16xf32>
    %43 = vector.extract_strided_slice %0 {offsets = [0, 6], sizes = [32, 1], strides = [1, 1]} : vector<32x8xf32> to vector<32x1xf32>
    %44 = vector.extract_strided_slice %5 {offsets = [6, 0], sizes = [1, 16], strides = [1, 1]} : vector<8x16xf32> to vector<1x16xf32>
    %45 = vector.broadcast %43 : vector<32x1xf32> to vector<32x16xf32>
    %46 = vector.broadcast %44 : vector<1x16xf32> to vector<32x16xf32>
    %47 = arith.mulf %45, %46 : vector<32x16xf32>
    %48 = arith.addf %42, %47 : vector<32x16xf32>
    %49 = vector.extract_strided_slice %0 {offsets = [0, 7], sizes = [32, 1], strides = [1, 1]} : vector<32x8xf32> to vector<32x1xf32>
    %50 = vector.extract_strided_slice %5 {offsets = [7, 0], sizes = [1, 16], strides = [1, 1]} : vector<8x16xf32> to vector<1x16xf32>
    %51 = vector.broadcast %49 : vector<32x1xf32> to vector<32x16xf32>
    %52 = vector.broadcast %50 : vector<1x16xf32> to vector<32x16xf32>
    %53 = arith.mulf %51, %52 : vector<32x16xf32>
    %54 = arith.addf %48, %53 : vector<32x16xf32>
    %55 = vector.broadcast %2 : vector<32x1xf32> to vector<32x16xf32>
    %56 = arith.addf %54, %55 : vector<32x16xf32>
    %cst_10 = arith.constant 0.000000e+00 : f32
    %57 = vector.broadcast %cst_10 : f32 to vector<32x16xf32>
    %58 = arith.maximumf %56, %57 : vector<32x16xf32>
    %cst_11 = arith.constant 0.000000e+00 : f32
    %59 = vector.broadcast %cst_11 : f32 to vector<8x16xf32>
    %60 = vector.extract_strided_slice %1 {offsets = [0, 0], sizes = [8, 1], strides = [1, 1]} : vector<8x32xf32> to vector<8x1xf32>
    %61 = vector.extract_strided_slice %58 {offsets = [0, 0], sizes = [1, 16], strides = [1, 1]} : vector<32x16xf32> to vector<1x16xf32>
    %62 = vector.broadcast %60 : vector<8x1xf32> to vector<8x16xf32>
    %63 = vector.broadcast %61 : vector<1x16xf32> to vector<8x16xf32>
    %64 = arith.mulf %62, %63 : vector<8x16xf32>
    %65 = arith.addf %59, %64 : vector<8x16xf32>
    %66 = vector.extract_strided_slice %1 {offsets = [0, 1], sizes = [8, 1], strides = [1, 1]} : vector<8x32xf32> to vector<8x1xf32>
    %67 = vector.extract_strided_slice %58 {offsets = [1, 0], sizes = [1, 16], strides = [1, 1]} : vector<32x16xf32> to vector<1x16xf32>
    %68 = vector.broadcast %66 : vector<8x1xf32> to vector<8x16xf32>
    %69 = vector.broadcast %67 : vector<1x16xf32> to vector<8x16xf32>
    %70 = arith.mulf %68, %69 : vector<8x16xf32>
    %71 = arith.addf %65, %70 : vector<8x16xf32>
    %72 = vector.extract_strided_slice %1 {offsets = [0, 2], sizes = [8, 1], strides = [1, 1]} : vector<8x32xf32> to vector<8x1xf32>
    %73 = vector.extract_strided_slice %58 {offsets = [2, 0], sizes = [1, 16], strides = [1, 1]} : vector<32x16xf32> to vector<1x16xf32>
    %74 = vector.broadcast %72 : vector<8x1xf32> to vector<8x16xf32>
    %75 = vector.broadcast %73 : vector<1x16xf32> to vector<8x16xf32>
    %76 = arith.mulf %74, %75 : vector<8x16xf32>
    %77 = arith.addf %71, %76 : vector<8x16xf32>
    %78 = vector.extract_strided_slice %1 {offsets = [0, 3], sizes = [8, 1], strides = [1, 1]} : vector<8x32xf32> to vector<8x1xf32>
    %79 = vector.extract_strided_slice %58 {offsets = [3, 0], sizes = [1, 16], strides = [1, 1]} : vector<32x16xf32> to vector<1x16xf32>
    %80 = vector.broadcast %78 : vector<8x1xf32> to vector<8x16xf32>
    %81 = vector.broadcast %79 : vector<1x16xf32> to vector<8x16xf32>
    %82 = arith.mulf %80, %81 : vector<8x16xf32>
    %83 = arith.addf %77, %82 : vector<8x16xf32>
    %84 = vector.extract_strided_slice %1 {offsets = [0, 4], sizes = [8, 1], strides = [1, 1]} : vector<8x32xf32> to vector<8x1xf32>
    %85 = vector.extract_strided_slice %58 {offsets = [4, 0], sizes = [1, 16], strides = [1, 1]} : vector<32x16xf32> to vector<1x16xf32>
    %86 = vector.broadcast %84 : vector<8x1xf32> to vector<8x16xf32>
    %87 = vector.broadcast %85 : vector<1x16xf32> to vector<8x16xf32>
    %88 = arith.mulf %86, %87 : vector<8x16xf32>
    %89 = arith.addf %83, %88 : vector<8x16xf32>
    %90 = vector.extract_strided_slice %1 {offsets = [0, 5], sizes = [8, 1], strides = [1, 1]} : vector<8x32xf32> to vector<8x1xf32>
    %91 = vector.extract_strided_slice %58 {offsets = [5, 0], sizes = [1, 16], strides = [1, 1]} : vector<32x16xf32> to vector<1x16xf32>
    %92 = vector.broadcast %90 : vector<8x1xf32> to vector<8x16xf32>
    %93 = vector.broadcast %91 : vector<1x16xf32> to vector<8x16xf32>
    %94 = arith.mulf %92, %93 : vector<8x16xf32>
    %95 = arith.addf %89, %94 : vector<8x16xf32>
    %96 = vector.extract_strided_slice %1 {offsets = [0, 6], sizes = [8, 1], strides = [1, 1]} : vector<8x32xf32> to vector<8x1xf32>
    %97 = vector.extract_strided_slice %58 {offsets = [6, 0], sizes = [1, 16], strides = [1, 1]} : vector<32x16xf32> to vector<1x16xf32>
    %98 = vector.broadcast %96 : vector<8x1xf32> to vector<8x16xf32>
    %99 = vector.broadcast %97 : vector<1x16xf32> to vector<8x16xf32>
    %100 = arith.mulf %98, %99 : vector<8x16xf32>
    %101 = arith.addf %95, %100 : vector<8x16xf32>
    %102 = vector.extract_strided_slice %1 {offsets = [0, 7], sizes = [8, 1], strides = [1, 1]} : vector<8x32xf32> to vector<8x1xf32>
    %103 = vector.extract_strided_slice %58 {offsets = [7, 0], sizes = [1, 16], strides = [1, 1]} : vector<32x16xf32> to vector<1x16xf32>
    %104 = vector.broadcast %102 : vector<8x1xf32> to vector<8x16xf32>
    %105 = vector.broadcast %103 : vector<1x16xf32> to vector<8x16xf32>
    %106 = arith.mulf %104, %105 : vector<8x16xf32>
    %107 = arith.addf %101, %106 : vector<8x16xf32>
    %108 = vector.extract_strided_slice %1 {offsets = [0, 8], sizes = [8, 1], strides = [1, 1]} : vector<8x32xf32> to vector<8x1xf32>
    %109 = vector.extract_strided_slice %58 {offsets = [8, 0], sizes = [1, 16], strides = [1, 1]} : vector<32x16xf32> to vector<1x16xf32>
    %110 = vector.broadcast %108 : vector<8x1xf32> to vector<8x16xf32>
    %111 = vector.broadcast %109 : vector<1x16xf32> to vector<8x16xf32>
    %112 = arith.mulf %110, %111 : vector<8x16xf32>
    %113 = arith.addf %107, %112 : vector<8x16xf32>
    %114 = vector.extract_strided_slice %1 {offsets = [0, 9], sizes = [8, 1], strides = [1, 1]} : vector<8x32xf32> to vector<8x1xf32>
    %115 = vector.extract_strided_slice %58 {offsets = [9, 0], sizes = [1, 16], strides = [1, 1]} : vector<32x16xf32> to vector<1x16xf32>
    %116 = vector.broadcast %114 : vector<8x1xf32> to vector<8x16xf32>
    %117 = vector.broadcast %115 : vector<1x16xf32> to vector<8x16xf32>
    %118 = arith.mulf %116, %117 : vector<8x16xf32>
    %119 = arith.addf %113, %118 : vector<8x16xf32>
    %120 = vector.extract_strided_slice %1 {offsets = [0, 10], sizes = [8, 1], strides = [1, 1]} : vector<8x32xf32> to vector<8x1xf32>
    %121 = vector.extract_strided_slice %58 {offsets = [10, 0], sizes = [1, 16], strides = [1, 1]} : vector<32x16xf32> to vector<1x16xf32>
    %122 = vector.broadcast %120 : vector<8x1xf32> to vector<8x16xf32>
    %123 = vector.broadcast %121 : vector<1x16xf32> to vector<8x16xf32>
    %124 = arith.mulf %122, %123 : vector<8x16xf32>
    %125 = arith.addf %119, %124 : vector<8x16xf32>
    %126 = vector.extract_strided_slice %1 {offsets = [0, 11], sizes = [8, 1], strides = [1, 1]} : vector<8x32xf32> to vector<8x1xf32>
    %127 = vector.extract_strided_slice %58 {offsets = [11, 0], sizes = [1, 16], strides = [1, 1]} : vector<32x16xf32> to vector<1x16xf32>
    %128 = vector.broadcast %126 : vector<8x1xf32> to vector<8x16xf32>
    %129 = vector.broadcast %127 : vector<1x16xf32> to vector<8x16xf32>
    %130 = arith.mulf %128, %129 : vector<8x16xf32>
    %131 = arith.addf %125, %130 : vector<8x16xf32>
    %132 = vector.extract_strided_slice %1 {offsets = [0, 12], sizes = [8, 1], strides = [1, 1]} : vector<8x32xf32> to vector<8x1xf32>
    %133 = vector.extract_strided_slice %58 {offsets = [12, 0], sizes = [1, 16], strides = [1, 1]} : vector<32x16xf32> to vector<1x16xf32>
    %134 = vector.broadcast %132 : vector<8x1xf32> to vector<8x16xf32>
    %135 = vector.broadcast %133 : vector<1x16xf32> to vector<8x16xf32>
    %136 = arith.mulf %134, %135 : vector<8x16xf32>
    %137 = arith.addf %131, %136 : vector<8x16xf32>
    %138 = vector.extract_strided_slice %1 {offsets = [0, 13], sizes = [8, 1], strides = [1, 1]} : vector<8x32xf32> to vector<8x1xf32>
    %139 = vector.extract_strided_slice %58 {offsets = [13, 0], sizes = [1, 16], strides = [1, 1]} : vector<32x16xf32> to vector<1x16xf32>
    %140 = vector.broadcast %138 : vector<8x1xf32> to vector<8x16xf32>
    %141 = vector.broadcast %139 : vector<1x16xf32> to vector<8x16xf32>
    %142 = arith.mulf %140, %141 : vector<8x16xf32>
    %143 = arith.addf %137, %142 : vector<8x16xf32>
    %144 = vector.extract_strided_slice %1 {offsets = [0, 14], sizes = [8, 1], strides = [1, 1]} : vector<8x32xf32> to vector<8x1xf32>
    %145 = vector.extract_strided_slice %58 {offsets = [14, 0], sizes = [1, 16], strides = [1, 1]} : vector<32x16xf32> to vector<1x16xf32>
    %146 = vector.broadcast %144 : vector<8x1xf32> to vector<8x16xf32>
    %147 = vector.broadcast %145 : vector<1x16xf32> to vector<8x16xf32>
    %148 = arith.mulf %146, %147 : vector<8x16xf32>
    %149 = arith.addf %143, %148 : vector<8x16xf32>
    %150 = vector.extract_strided_slice %1 {offsets = [0, 15], sizes = [8, 1], strides = [1, 1]} : vector<8x32xf32> to vector<8x1xf32>
    %151 = vector.extract_strided_slice %58 {offsets = [15, 0], sizes = [1, 16], strides = [1, 1]} : vector<32x16xf32> to vector<1x16xf32>
    %152 = vector.broadcast %150 : vector<8x1xf32> to vector<8x16xf32>
    %153 = vector.broadcast %151 : vector<1x16xf32> to vector<8x16xf32>
    %154 = arith.mulf %152, %153 : vector<8x16xf32>
    %155 = arith.addf %149, %154 : vector<8x16xf32>
    %156 = vector.extract_strided_slice %1 {offsets = [0, 16], sizes = [8, 1], strides = [1, 1]} : vector<8x32xf32> to vector<8x1xf32>
    %157 = vector.extract_strided_slice %58 {offsets = [16, 0], sizes = [1, 16], strides = [1, 1]} : vector<32x16xf32> to vector<1x16xf32>
    %158 = vector.broadcast %156 : vector<8x1xf32> to vector<8x16xf32>
    %159 = vector.broadcast %157 : vector<1x16xf32> to vector<8x16xf32>
    %160 = arith.mulf %158, %159 : vector<8x16xf32>
    %161 = arith.addf %155, %160 : vector<8x16xf32>
    %162 = vector.extract_strided_slice %1 {offsets = [0, 17], sizes = [8, 1], strides = [1, 1]} : vector<8x32xf32> to vector<8x1xf32>
    %163 = vector.extract_strided_slice %58 {offsets = [17, 0], sizes = [1, 16], strides = [1, 1]} : vector<32x16xf32> to vector<1x16xf32>
    %164 = vector.broadcast %162 : vector<8x1xf32> to vector<8x16xf32>
    %165 = vector.broadcast %163 : vector<1x16xf32> to vector<8x16xf32>
    %166 = arith.mulf %164, %165 : vector<8x16xf32>
    %167 = arith.addf %161, %166 : vector<8x16xf32>
    %168 = vector.extract_strided_slice %1 {offsets = [0, 18], sizes = [8, 1], strides = [1, 1]} : vector<8x32xf32> to vector<8x1xf32>
    %169 = vector.extract_strided_slice %58 {offsets = [18, 0], sizes = [1, 16], strides = [1, 1]} : vector<32x16xf32> to vector<1x16xf32>
    %170 = vector.broadcast %168 : vector<8x1xf32> to vector<8x16xf32>
    %171 = vector.broadcast %169 : vector<1x16xf32> to vector<8x16xf32>
    %172 = arith.mulf %170, %171 : vector<8x16xf32>
    %173 = arith.addf %167, %172 : vector<8x16xf32>
    %174 = vector.extract_strided_slice %1 {offsets = [0, 19], sizes = [8, 1], strides = [1, 1]} : vector<8x32xf32> to vector<8x1xf32>
    %175 = vector.extract_strided_slice %58 {offsets = [19, 0], sizes = [1, 16], strides = [1, 1]} : vector<32x16xf32> to vector<1x16xf32>
    %176 = vector.broadcast %174 : vector<8x1xf32> to vector<8x16xf32>
    %177 = vector.broadcast %175 : vector<1x16xf32> to vector<8x16xf32>
    %178 = arith.mulf %176, %177 : vector<8x16xf32>
    %179 = arith.addf %173, %178 : vector<8x16xf32>
    %180 = vector.extract_strided_slice %1 {offsets = [0, 20], sizes = [8, 1], strides = [1, 1]} : vector<8x32xf32> to vector<8x1xf32>
    %181 = vector.extract_strided_slice %58 {offsets = [20, 0], sizes = [1, 16], strides = [1, 1]} : vector<32x16xf32> to vector<1x16xf32>
    %182 = vector.broadcast %180 : vector<8x1xf32> to vector<8x16xf32>
    %183 = vector.broadcast %181 : vector<1x16xf32> to vector<8x16xf32>
    %184 = arith.mulf %182, %183 : vector<8x16xf32>
    %185 = arith.addf %179, %184 : vector<8x16xf32>
    %186 = vector.extract_strided_slice %1 {offsets = [0, 21], sizes = [8, 1], strides = [1, 1]} : vector<8x32xf32> to vector<8x1xf32>
    %187 = vector.extract_strided_slice %58 {offsets = [21, 0], sizes = [1, 16], strides = [1, 1]} : vector<32x16xf32> to vector<1x16xf32>
    %188 = vector.broadcast %186 : vector<8x1xf32> to vector<8x16xf32>
    %189 = vector.broadcast %187 : vector<1x16xf32> to vector<8x16xf32>
    %190 = arith.mulf %188, %189 : vector<8x16xf32>
    %191 = arith.addf %185, %190 : vector<8x16xf32>
    %192 = vector.extract_strided_slice %1 {offsets = [0, 22], sizes = [8, 1], strides = [1, 1]} : vector<8x32xf32> to vector<8x1xf32>
    %193 = vector.extract_strided_slice %58 {offsets = [22, 0], sizes = [1, 16], strides = [1, 1]} : vector<32x16xf32> to vector<1x16xf32>
    %194 = vector.broadcast %192 : vector<8x1xf32> to vector<8x16xf32>
    %195 = vector.broadcast %193 : vector<1x16xf32> to vector<8x16xf32>
    %196 = arith.mulf %194, %195 : vector<8x16xf32>
    %197 = arith.addf %191, %196 : vector<8x16xf32>
    %198 = vector.extract_strided_slice %1 {offsets = [0, 23], sizes = [8, 1], strides = [1, 1]} : vector<8x32xf32> to vector<8x1xf32>
    %199 = vector.extract_strided_slice %58 {offsets = [23, 0], sizes = [1, 16], strides = [1, 1]} : vector<32x16xf32> to vector<1x16xf32>
    %200 = vector.broadcast %198 : vector<8x1xf32> to vector<8x16xf32>
    %201 = vector.broadcast %199 : vector<1x16xf32> to vector<8x16xf32>
    %202 = arith.mulf %200, %201 : vector<8x16xf32>
    %203 = arith.addf %197, %202 : vector<8x16xf32>
    %204 = vector.extract_strided_slice %1 {offsets = [0, 24], sizes = [8, 1], strides = [1, 1]} : vector<8x32xf32> to vector<8x1xf32>
    %205 = vector.extract_strided_slice %58 {offsets = [24, 0], sizes = [1, 16], strides = [1, 1]} : vector<32x16xf32> to vector<1x16xf32>
    %206 = vector.broadcast %204 : vector<8x1xf32> to vector<8x16xf32>
    %207 = vector.broadcast %205 : vector<1x16xf32> to vector<8x16xf32>
    %208 = arith.mulf %206, %207 : vector<8x16xf32>
    %209 = arith.addf %203, %208 : vector<8x16xf32>
    %210 = vector.extract_strided_slice %1 {offsets = [0, 25], sizes = [8, 1], strides = [1, 1]} : vector<8x32xf32> to vector<8x1xf32>
    %211 = vector.extract_strided_slice %58 {offsets = [25, 0], sizes = [1, 16], strides = [1, 1]} : vector<32x16xf32> to vector<1x16xf32>
    %212 = vector.broadcast %210 : vector<8x1xf32> to vector<8x16xf32>
    %213 = vector.broadcast %211 : vector<1x16xf32> to vector<8x16xf32>
    %214 = arith.mulf %212, %213 : vector<8x16xf32>
    %215 = arith.addf %209, %214 : vector<8x16xf32>
    %216 = vector.extract_strided_slice %1 {offsets = [0, 26], sizes = [8, 1], strides = [1, 1]} : vector<8x32xf32> to vector<8x1xf32>
    %217 = vector.extract_strided_slice %58 {offsets = [26, 0], sizes = [1, 16], strides = [1, 1]} : vector<32x16xf32> to vector<1x16xf32>
    %218 = vector.broadcast %216 : vector<8x1xf32> to vector<8x16xf32>
    %219 = vector.broadcast %217 : vector<1x16xf32> to vector<8x16xf32>
    %220 = arith.mulf %218, %219 : vector<8x16xf32>
    %221 = arith.addf %215, %220 : vector<8x16xf32>
    %222 = vector.extract_strided_slice %1 {offsets = [0, 27], sizes = [8, 1], strides = [1, 1]} : vector<8x32xf32> to vector<8x1xf32>
    %223 = vector.extract_strided_slice %58 {offsets = [27, 0], sizes = [1, 16], strides = [1, 1]} : vector<32x16xf32> to vector<1x16xf32>
    %224 = vector.broadcast %222 : vector<8x1xf32> to vector<8x16xf32>
    %225 = vector.broadcast %223 : vector<1x16xf32> to vector<8x16xf32>
    %226 = arith.mulf %224, %225 : vector<8x16xf32>
    %227 = arith.addf %221, %226 : vector<8x16xf32>
    %228 = vector.extract_strided_slice %1 {offsets = [0, 28], sizes = [8, 1], strides = [1, 1]} : vector<8x32xf32> to vector<8x1xf32>
    %229 = vector.extract_strided_slice %58 {offsets = [28, 0], sizes = [1, 16], strides = [1, 1]} : vector<32x16xf32> to vector<1x16xf32>
    %230 = vector.broadcast %228 : vector<8x1xf32> to vector<8x16xf32>
    %231 = vector.broadcast %229 : vector<1x16xf32> to vector<8x16xf32>
    %232 = arith.mulf %230, %231 : vector<8x16xf32>
    %233 = arith.addf %227, %232 : vector<8x16xf32>
    %234 = vector.extract_strided_slice %1 {offsets = [0, 29], sizes = [8, 1], strides = [1, 1]} : vector<8x32xf32> to vector<8x1xf32>
    %235 = vector.extract_strided_slice %58 {offsets = [29, 0], sizes = [1, 16], strides = [1, 1]} : vector<32x16xf32> to vector<1x16xf32>
    %236 = vector.broadcast %234 : vector<8x1xf32> to vector<8x16xf32>
    %237 = vector.broadcast %235 : vector<1x16xf32> to vector<8x16xf32>
    %238 = arith.mulf %236, %237 : vector<8x16xf32>
    %239 = arith.addf %233, %238 : vector<8x16xf32>
    %240 = vector.extract_strided_slice %1 {offsets = [0, 30], sizes = [8, 1], strides = [1, 1]} : vector<8x32xf32> to vector<8x1xf32>
    %241 = vector.extract_strided_slice %58 {offsets = [30, 0], sizes = [1, 16], strides = [1, 1]} : vector<32x16xf32> to vector<1x16xf32>
    %242 = vector.broadcast %240 : vector<8x1xf32> to vector<8x16xf32>
    %243 = vector.broadcast %241 : vector<1x16xf32> to vector<8x16xf32>
    %244 = arith.mulf %242, %243 : vector<8x16xf32>
    %245 = arith.addf %239, %244 : vector<8x16xf32>
    %246 = vector.extract_strided_slice %1 {offsets = [0, 31], sizes = [8, 1], strides = [1, 1]} : vector<8x32xf32> to vector<8x1xf32>
    %247 = vector.extract_strided_slice %58 {offsets = [31, 0], sizes = [1, 16], strides = [1, 1]} : vector<32x16xf32> to vector<1x16xf32>
    %248 = vector.broadcast %246 : vector<8x1xf32> to vector<8x16xf32>
    %249 = vector.broadcast %247 : vector<1x16xf32> to vector<8x16xf32>
    %250 = arith.mulf %248, %249 : vector<8x16xf32>
    %251 = arith.addf %245, %250 : vector<8x16xf32>
    %252 = vector.broadcast %3 : vector<8x1xf32> to vector<8x16xf32>
    %253 = arith.addf %251, %252 : vector<8x16xf32>
    %c0_12 = arith.constant 0 : index
    %c0_13 = arith.constant 0 : index
    %c0_14 = arith.constant 0 : index
    %254 = vector.load %arg7[%c0_12, %c0_13, %c0_14] : memref<1x8x16xf32, #tpu.memory_space<vmem>>, vector<1x8x16xf32>
    %255 = vector.shape_cast %254 : vector<1x8x16xf32> to vector<8x16xf32>
    %256 = vector.shape_cast %253 : vector<8x16xf32> to vector<1x8x16xf32>
    tpu.vector_store %arg7[%c0_12, %c0_13, %c0_14], %256 {strides = array<i32>} : memref<1x8x16xf32, #tpu.memory_space<vmem>>, vector<1x8x16xf32>,
    return
  }
  func.func @transform_0(%arg0: i32, %arg1: i32) -> (i32, i32, i32) {
    %c0_i32 = arith.constant 0 : i32
    %c0_i32_0 = arith.constant 0 : i32
    return %arg0, %c0_i32, %arg1 : i32, i32, i32
  }
  func.func @transform_1(%arg0: i32, %arg1: i32) -> (i32, i32) {
    %c0_i32 = arith.constant 0 : i32
    %c0_i32_0 = arith.constant 0 : i32
    %c0_i32_1 = arith.constant 0 : i32
    return %c0_i32, %c0_i32_0 : i32, i32
  }
  func.func @transform_2(%arg0: i32, %arg1: i32) -> (i32, i32) {
    %c0_i32 = arith.constant 0 : i32
    %c0_i32_0 = arith.constant 0 : i32
    %c0_i32_1 = arith.constant 0 : i32
    return %c0_i32, %c0_i32_0 : i32, i32
  }
  func.func @transform_3(%arg0: i32, %arg1: i32) -> (i32, i32) {
    %c0_i32 = arith.constant 0 : i32
    %c0_i32_0 = arith.constant 0 : i32
    %c0_i32_1 = arith.constant 0 : i32
    return %c0_i32, %c0_i32_0 : i32, i32
  }
  func.func @transform_4(%arg0: i32, %arg1: i32) -> (i32, i32) {
    %c0_i32 = arith.constant 0 : i32
    %c0_i32_0 = arith.constant 0 : i32
    %c0_i32_1 = arith.constant 0 : i32
    return %c0_i32, %c0_i32_0 : i32, i32
  }
  func.func @transform_5(%arg0: i32, %arg1: i32) -> (i32, i32, i32) {
    %c0_i32 = arith.constant 0 : i32
    %c0_i32_0 = arith.constant 0 : i32
    return %arg0, %c0_i32, %arg1 : i32, i32, i32
  }
}

</mosaic_0001>

<bundles_post_ra>
// kernel: tpu_custom_call.1
= control target key start
LH: loop header
LB: loop body
LE: loop exit
PB: predicated region body
PF: predicated region fallthrough
CT: control target
= control target key end

     0   :  { %10 = vsyncpa [#allocation3], 0  ;;  %s1382_s0 = inlined_call_operand.vmem [shape: f32[2,8,16], index: 0, kind: input, shape index: {}]   ;;  %s1383_s1 = inlined_call_operand.vmem [shape: f32[32,8], index: 1, kind: input, shape index: {}]   ;;  %s1384_s2 = inlined_call_operand.vmem [shape: f32[32,1], index: 2, kind: input, shape index: {}]   ;;  %s1385_s3 = inlined_call_operand.vmem [shape: f32[8,32], index: 3, kind: input, shape index: {}]   ;;  %s1386_s4 = inlined_call_operand.vmem [shape: f32[8,1], index: 4, kind: input, shape index: {}]   ;;  %s1387_s5 = inlined_call_operand.hbm [shape: f32[2,8,16], index: 5, kind: output, shape index: {}]  }
   0x1   :  { %12 = vsyncpa [#allocation3 + $0x1], 0  ;;  %s1105_s18 = smov 0   ;;  %s1107_s19 = smov 0  }
   0x2   :  { %s1109_s20 = smov 0   ;;  %s1111_s21 = smov 0  }
   0x3   :  { %s1113_s22 = smov 0   ;;  %s1115_s23 = smov 0  }
   0x4 LB: > { %s809_s24 = sadd.s32 4294967295, %s1041_s23   ;;  %s810_s25 = sadd.s32 4294967294, %s1041_s23   ;;  %s1041_s23 = sphi %s1115_s23, %s18_s23   ;;  %s1037_s22 = sphi %s1113_s22, %s1394_s22   ;;  %s1033_s21 = sphi %s1111_s21, %s1393_s21   ;;  %s1029_s20 = sphi %s1109_s20, %s1392_s20   ;;  %s1025_s19 = sphi %s1107_s19, %s1391_s19   ;;  %s1021_s18 = sphi %s1105_s18, %s1390_s18  }
   0x5   : > { %s30_s26 = sadd.s32 1, %s1037_s22  ;;  %s151_s27 = sadd.s32 1, %s1029_s20 }
   0x6   : > { %p32_p0 = scmp.ge.s32.totalorder %s30_s26, 2  ;;  %p161_p1 = scmp.ne.s32.totalorder %s1029_s20, %s1025_s19 }
   0x7   : > { %p162_p2 = scmp.eq.s32.totalorder %s809_s24, 1  ;;  %p167_p3 = scmp.ne.s32.totalorder %s1025_s19, %s1021_s18 }
   0x8   : > { %s1396_s26 = smov (%p32_p0, %s30_s26), 0  ;;  %p168_p5 = scmp.eq.s32.totalorder %s810_s25, 1 }
   0x9   : > { %p1145_p4 = por %p162_p2, %p161_p1  ;;  %s146_s29 = ssub.s32 %s1037_s22, %s1396_s26 }
   0xa   : > { %p813_p6 = scmp.ge.s32.totalorder %s1041_s23, 1  ;;  %p149_p7 = scmp.eq.s32.totalorder %s146_s29, 0 }
   0xb   : > { %p1152_p8 = por %p168_p5, %p167_p3  ;;  %p208_p9 = scmp.lt.s32.totalorder %s1041_s23, 3 }
   0xc   : > { %s1158_s6 = scalar_select %p149_p7, %s1029_s20, %s151_s27  }
   0xd   : > { %p209_p10 = pnand %p813_p6, %p208_p9 }
   0xe   : > { %p238_p11 = scmp.lt.s32.totalorder (!%p209_p10), %s1033_s21, 1  ;;  %s817_s25 = sshll.u32 (!%p209_p10), %s1033_s21, 3 }
   0xf   : > { %212 = sbr.rel (%p209_p10) target bundleno = 376 (0x178), region = 40  ;;  %s733_s7 = scalar_lea.hbm (!%p209_p10), %s1387_s5, %s817_s25 }
  0x10   : > { %s983_s15 = scalar_lea.hbm (!%p209_p10), %s1387_s5, 16 }
  0x14   : > { %v1163_v0 = vld [vmem:[%s1383_s1 + $0x10] sm:$0xff]  ;;  %v1168_v1 = vld [vmem:[%s1383_s1] sm:$0xff]  ;;  %v1043_v2 = vmov 1   ;;  %v1044_v3 = vmov 0   ;;  %v248_v4 = vld [vmem:[%s1383_s1 + $0x18] sm:$0xff]  ;;  %v1045_v6 = vmov 2  }
  0x15   : > { %909 = vset.pattern.permute.xlu0 %v1043_v2  ;;  %908 = vset.pattern.permute.xlu2 %v1043_v2  ;;  %v246_v5 = vld [vmem:[%s1383_s1 + $0x8] sm:$0xff]  ;;  %v1046_v7 = vmov 4   ;;  %v1047_v8 = vmov 6   ;;  %v1048_v9 = vmov 3   ;;  %v1049_v10 = vmov 7   ;;  %v1205_v11 = vld [vmem:[%s1385_s3] sm:$0xff] }
  0x16   : > { %907 = vset.pattern.permute.xlu1 %v1044_v3  ;;  %294 = vperm.xlu0 %909, %v1163_v0   ;;  %v1050_v12 = vmov 5   ;;  %v1051_v13 = vmov 10   ;;  %v1052_v15 = vmov 15   ;;  %s239_s17 = scalar_select %p238_p11, %s1033_s21, 1  ;;  %v251_v17 = vld [vmem:[%s1384_s2 + $0x8] sm:$0xff]  ;;  %v250_v18 = vld [vmem:[%s1384_s2] sm:$0xff] }
  0x17   : > { %268 = vperm.xlu1 %907, %v1163_v0   ;;  %286 = vperm.xlu2 %908, %v1168_v1   ;;  %v1053_v19 = vmov 20   ;;  %v253_v22 = vld [vmem:[%s1384_s2 + $0x18] sm:$0xff]  ;;  %v252_v23 = vld [vmem:[%s1384_s2 + $0x10] sm:$0xff]  ;;  %v1054_v28 = vmov 25   ;;  %v1055_v37 = vmov 30   ;;  %v1056_v54 = vmov 9  }
  0x18   : > { %s815_s24 = sshll.u32 %s239_s17, 3  ;;  %v1057_v55 = vmov 8   ;;  %v1058_v60 = vmov 12   ;;  %v1059_v61 = vmov 11   ;;  %s235_s17 = sand.u32 1, %s1025_s19   ;;  %vm719_vm0 = vcmask 130048  }
  0x19   : > { %s244_s10 = scalar_lea.vmem %s1382_s0, %s815_s24  ;;  %s814_s24 = sshll.u32 %s235_s17, 3 }
  0x1a   : > { %v1238_v20 = vld [vmem:[%s244_s10] sm:$0xff]  ;;  %s237_s8 = scalar_lea.vmem [#allocation2], %s814_s24  ;;  %s737_s10 = sshll.u32 %s733_s7, 4  ;;  %s738_s10 = int_to_ptr.hbm [resolvable:$true] %s737_s10 }
  0x1b   : > { %v1249_v24 = vperm.slane %v1238_v20, 1  ;;  %v1252_v25 = vperm.slane %v1238_v20, 0  ;;  %v1255_v26 = vperm.slane %v1238_v20, 2  ;;  %v1271_v40 = vperm.slane %v1238_v20, 3  ;;  %s735_s9 = sshll.u32 %s237_s8, 4  ;;  %s722_s21 = scalar_lea.sflag [#allocation3], %s235_s17  ;;  %s736_s9 = int_to_ptr.vmem [resolvable:$true] %s735_s9 }
  0x1c   : > { %v376_v59 = vperm.slane %v1238_v20, 4  ;;  %s977_s11 = sshra.s32 %s738_s10, 4  ;;  %s978_s11 = int_to_ptr.hbm [resolvable:$true] %s977_s11 }
  0x1d   : > { %s979_s12 = scalar_lea.hbm %s978_s11, 8  ;;  %p984_p1 = scmp.lt.s32.totalorder %s978_s11, %s1387_s5 }
  0x1e   : > { %913 = vset.pattern.permute.xlu0 %v1045_v6  ;;  %p980_p12 = scmp.ne.s32.totalorder %s978_s11, %s979_s12  ;;  %p985_p2 = scmp.lt.s32.totalorder %s983_s15, %s979_s12 }
  0x1f   : > { %273 = vperm.xlu1 %907, %v248_v4   ;;  %290 = vperm.xlu2 %908, %v246_v5  }
  0x20   : > { %323 = vperm.xlu0 %913, %v248_v4   ;;  %p981_p13 = pnand %p980_p12, %p1145_p4  ;;  %p986_p3 = por %p985_p2, %p984_p1 }
  0x22   : > { %p982_p0 = pneg %p981_p13 }
  0x24   : > { %p987_p5 = pnand %p986_p3, %p982_p0 }
  0x27   : > { %910 = vset.pattern.permute.xlu1 %v1043_v2  ;;  %911 = vset.pattern.permute.xlu2 %v1045_v6 }
  0x28   : > { %916 = vset.pattern.permute.xlu0 %v1046_v7  ;;  %298 = vperm.xlu1 %910, %v248_v4  }
  0x29   : > { %311 = vperm.xlu2 %911, %v1168_v1   ;;  %361 = vperm.xlu0 %916, %v1168_v1  }
  0x30   : > { %912 = vset.pattern.permute.xlu1 %v1045_v6 }
  0x31   : > { %319 = vperm.xlu2 %911, %v1163_v0   ;;  %315 = vperm.xlu1 %912, %v246_v5  }
  0x32   : > { %923 = vset.pattern.permute.xlu0 %v1047_v8 }
  0x33   : > { %419 = vperm.xlu0 %923, %v1163_v0  }
  0x39   : > { %915 = vset.pattern.permute.xlu2 %v1048_v9  ;;  %914 = vset.pattern.permute.xlu1 %v1048_v9 }
  0x3a   : > { %340 = vperm.xlu2 %915, %v246_v5   ;;  %336 = vperm.xlu1 %914, %v1168_v1  }
  0x3b   : > { %926 = vset.pattern.permute.xlu0 %v1049_v10 }
  0x3c   : > { %448 = vperm.xlu0 %926, %v248_v4  }
  0x42   : > { %348 = vperm.xlu2 %915, %v248_v4   ;;  %344 = vperm.xlu1 %914, %v1163_v0  }
  0x44   : > { %927 = vset.pattern.permute.xlu0 %v1044_v3 }
  0x45   : > { %258 = vperm.xlu0 %927, %v1168_v1  }
  0x4a   : > { %918 = vset.pattern.permute.xlu2 %v1046_v7  ;;  %917 = vset.pattern.permute.xlu1 %v1046_v7 }
  0x4b   : > { %369 = vperm.xlu2 %918, %v1163_v0   ;;  %365 = vperm.xlu1 %917, %v246_v5  }
  0x4d   : > { %263 = vperm.xlu0 %927, %v246_v5  }
  0x53   : > { %919 = vset.pattern.permute.xlu2 %v1050_v12  ;;  %373 = vperm.xlu1 %917, %v248_v4  }
  0x54   : > { %386 = vperm.xlu2 %919, %v1168_v1  }
  0x55   : > { %490 = vperm.xlu0 %927, %v1205_v11  }
  0x5b   : > { %920 = vset.pattern.permute.xlu1 %v1050_v12 }
  0x5c   : > { %398 = vperm.xlu2 %919, %v248_v4   ;;  %394 = vperm.xlu1 %920, %v1163_v0  }
  0x5d   : > { %930 = vset.pattern.permute.xlu0 %v1050_v12 }
  0x5e   : > { %390 = vperm.xlu0 %930, %v246_v5  }
  0x64   : > { %922 = vset.pattern.permute.xlu2 %v1047_v8  ;;  %921 = vset.pattern.permute.xlu1 %v1047_v8 }
  0x65   : > { %415 = vperm.xlu2 %922, %v246_v5   ;;  %411 = vperm.xlu1 %921, %v1168_v1  }
  0x66   : > { %525 = vperm.xlu0 %930, %v1205_v11  }
  0x6d   : > { %924 = vset.pattern.permute.xlu2 %v1049_v10  ;;  %423 = vperm.xlu1 %921, %v248_v4  }
  0x6e   : > { %939 = vset.pattern.permute.xlu0 %v1051_v13  ;;  %436 = vperm.xlu2 %924, %v1168_v1  }
  0x6f   : > { %560 = vperm.xlu0 %939, %v1205_v11  }
  0x71   : > { %v1217_v14 = vpop.permute.xlu2 %286 }
  0x75   : > { %925 = vset.pattern.permute.xlu1 %v1049_v10 }
  0x76   : > { %444 = vperm.xlu2 %924, %v1163_v0   ;;  %440 = vperm.xlu1 %925, %v246_v5   ;;  %v302_v5 = vmul.f32 %v1249_v24, %v1217_v14 }
  0x77   : > { %944 = vset.pattern.permute.xlu0 %v1052_v15 }
  0x78   : > { %595 = vperm.xlu0 %944, %v1205_v11  }
  0x79   : > { %v1224_v16 = vpop.permute.xlu2 %290 }
  0x7e   : > { %929 = vset.pattern.permute.xlu2 %v1044_v3  ;;  %928 = vset.pattern.permute.xlu1 %v1044_v3 }
  0x7f   : > { %467 = vperm.xlu2 %929, %v251_v17   ;;  %462 = vperm.xlu1 %928, %v250_v18   ;;  %v1060_v17 = vmov 14   ;;  %v1061_v18 = vmov 13  }
  0x80   : > { %949 = vset.pattern.permute.xlu0 %v1053_v19 }
  0x81   : > { %630 = vperm.xlu0 %949, %v1205_v11  }
  0x83   : > { %v1240_v21 = vpop.permute.xlu2 %311 }
  0x87   : > { %477 = vperm.xlu2 %929, %v253_v22   ;;  %472 = vperm.xlu1 %928, %v252_v23  }
  0x88   : > { %v295_v27 = vpop.permute.xlu0 %294 }
  0x89   : > { %954 = vset.pattern.permute.xlu0 %v1054_v28  ;;  %v304_v29 = vmul.f32 %v1249_v24, %v295_v27  ;;  %v269_v30 = vpop.permute.xlu1 %268  ;;  %v303_v27 = vmul.f32 %v1249_v24, %v1224_v16 }
  0x8a   : > { %v279_v31 = vmul.f32 %v1252_v25, %v269_v30  ;;  %665 = vperm.xlu0 %954, %v1205_v11  }
  0x8b   : > { %v320_v32 = vpop.permute.xlu2 %319 }
  0x8c   : > { %v308_v33 = vadd.f32 %v304_v29, %v279_v31  ;;  %v329_v34 = vmul.f32 %v1255_v26, %v320_v32 }
  0x8e   : > { %v333_v35 = vadd.f32 %v329_v34, %v308_v33 }
  0x8f   : > { %932 = vset.pattern.permute.xlu2 %v1045_v6  ;;  %931 = vset.pattern.permute.xlu1 %v1043_v2 }
  0x90   : > { %504 = vperm.xlu2 %932, %v1205_v11   ;;  %497 = vperm.xlu1 %931, %v1205_v11  }
  0x91   : > { %v274_v36 = vpop.permute.xlu1 %273 }
  0x92   : > { %959 = vset.pattern.permute.xlu0 %v1055_v37  ;;  %v324_v38 = vpop.permute.xlu0 %323  ;;  %v280_v42 = vmul.f32 %v1252_v25, %v274_v36  ;;  %v1062_v36 = vmov 17   ;;  %v1063_v37 = vmov 16  }
  0x93   : > { %700 = vperm.xlu0 %959, %v1205_v11   ;;  %v330_v43 = vmul.f32 %v1255_v26, %v324_v38 }
  0x94   : > { %v1266_v39 = vpop.permute.xlu2 %340 }
  0x95   : > { %v353_v33 = vmul.f32 %v1271_v40, %v1266_v39 }
  0x98   : > { %934 = vset.pattern.permute.xlu2 %v1046_v7  ;;  %933 = vset.pattern.permute.xlu1 %v1048_v9  ;;  %v401_v9 = vperm.slane %v1238_v20, 5 }
  0x99   : > { %518 = vperm.xlu2 %934, %v1205_v11   ;;  %511 = vperm.xlu1 %933, %v1205_v11  }
  0x9a   : > { %v299_v41 = vpop.permute.xlu1 %298 }
  0x9b   : > { %v305_v44 = vmul.f32 %v1249_v24, %v299_v41  ;;  %v362_v45 = vpop.permute.xlu0 %361  ;;  %962 = vset.pattern.permute.xlu0 %v1044_v3 }
  0x9c   : > { %v349_v46 = vpop.permute.xlu2 %348  ;;  %v377_v12 = vmul.f32 %v376_v59, %v362_v45  ;;  %v1064_v45 = vmov 19  }
  0x9d   : > { %v309_v47 = vadd.f32 %v305_v44, %v280_v42  ;;  %v355_v48 = vmul.f32 %v1271_v40, %v349_v46  ;;  %v451_v44 = vperm.slane %v1238_v20, 7  ;;  %v1065_v46 = vmov 18  }
  0x9f   : > { %v334_v49 = vadd.f32 %v330_v43, %v309_v47  ;;  %v426_v43 = vperm.slane %v1238_v20, 6 }
  0xa1   : > { %v1280_v50 = vadd.f32 %v355_v48, %v334_v49  ;;  %936 = vset.pattern.permute.xlu2 %v1049_v10  ;;  %935 = vset.pattern.permute.xlu1 %v1047_v8  ;;  %v327_v8 = vmul.f32 %v1255_v26, %v1240_v21 }
  0xa2   : > { %539 = vperm.xlu2 %936, %v1205_v11   ;;  %532 = vperm.xlu1 %935, %v1205_v11  }
  0xa3   : > { %v316_v51 = vpop.permute.xlu1 %315 }
  0xa4   : > { %v328_v30 = vmul.f32 %v1255_v26, %v316_v51 }
  0xa5   : > { %v1286_v52 = vpop.permute.xlu0 %419  ;;  %v370_v53 = vpop.permute.xlu2 %369 }
  0xa6   : > { %v379_v63 = vmul.f32 %v376_v59, %v370_v53  ;;  %v429_v48 = vmul.f32 %v426_v43, %v1286_v52 }
  0xaa   : > { %938 = vset.pattern.permute.xlu2 %v1056_v54  ;;  %937 = vset.pattern.permute.xlu1 %v1057_v55 }
  0xab   : > { %553 = vperm.xlu2 %938, %v1205_v11   ;;  %546 = vperm.xlu1 %937, %v1205_v11  }
  0xac   : > { %v337_v56 = vpop.permute.xlu1 %336 }
  0xad   : > { %v352_v13 = vmul.f32 %v1271_v40, %v337_v56 }
  0xae   : > { %v1290_v57 = vpop.permute.xlu0 %448  ;;  %v387_v58 = vpop.permute.xlu2 %386 }
  0xaf   : > { %v402_v19 = vmul.f32 %v401_v9, %v387_v58 }
  0xb3   : > { %941 = vset.pattern.permute.xlu2 %v1058_v60  ;;  %940 = vset.pattern.permute.xlu1 %v1059_v61  ;;  %v1066_v61 = vmov 22  }
  0xb4   : > { %574 = vperm.xlu2 %941, %v1205_v11   ;;  %567 = vperm.xlu1 %940, %v1205_v11   ;;  %v345_v62 = vpop.permute.xlu1 %344 }
  0xb5   : > { %v354_v0 = vmul.f32 %v1271_v40, %v345_v62  ;;  %v1067_v62 = vmov 21  }
  0xb6   : > { %v399_v1 = vpop.permute.xlu2 %398 }
  0xb7   : > { %v358_v2 = vadd.f32 %v354_v0, %v333_v35  ;;  %v259_v4 = vpop.permute.xlu0 %258  ;;  %v405_v35 = vmul.f32 %v401_v9, %v399_v1 }
  0xb8   : > { %v277_v6 = vmul.f32 %v1252_v25, %v259_v4  ;;  %v455_v4 = vmul.f32 %v451_v44, %v1290_v57 }
  0xb9   : > { %v383_v7 = vadd.f32 %v379_v63, %v358_v2 }
  0xba   : > { %v306_v10 = vadd.f32 %v302_v5, %v277_v6  ;;  %v1068_v6 = vmov 24  }
  0xbc   : > { %v331_v15 = vadd.f32 %v327_v8, %v306_v10  ;;  %943 = vset.pattern.permute.xlu2 %v1060_v17  ;;  %942 = vset.pattern.permute.xlu1 %v1061_v18  ;;  %v1070_v17 = vmov 27   ;;  %v1071_v18 = vmov 26  }
  0xbd   : > { %588 = vperm.xlu2 %943, %v1205_v11   ;;  %581 = vperm.xlu1 %942, %v1205_v11   ;;  %v366_v14 = vpop.permute.xlu1 %365 }
  0xbe   : > { %v356_v22 = vadd.f32 %v352_v13, %v331_v15  ;;  %v378_v41 = vmul.f32 %v376_v59, %v366_v14 }
  0xbf   : > { %v264_v23 = vpop.permute.xlu0 %263  ;;  %v416_v21 = vpop.permute.xlu2 %415 }
  0xc0   : > { %v278_v28 = vmul.f32 %v1252_v25, %v264_v23  ;;  %v381_v29 = vadd.f32 %v377_v12, %v356_v22  ;;  %v428_v53 = vmul.f32 %v426_v43, %v416_v21  ;;  %v1073_v22 = vmov 28  }
  0xc2   : > { %v307_v31 = vadd.f32 %v303_v27, %v278_v28  ;;  %v406_v32 = vadd.f32 %v402_v19, %v381_v29  ;;  %v1072_v19 = vmov 29   ;;  %v254_v28 = vld [vmem:[%s1386_s4] sm:$0xff] }
  0xc4   : > { %v332_v34 = vadd.f32 %v328_v30, %v307_v31  ;;  %v1074_v31 = vmov 31  }
  0xc5   : > { %946 = vset.pattern.permute.xlu2 %v1062_v36  ;;  %945 = vset.pattern.permute.xlu1 %v1063_v37  ;;  %v374_v38 = vpop.permute.xlu1 %373 }
  0xc6   : > { %v380_v42 = vmul.f32 %v376_v59, %v374_v38  ;;  %609 = vperm.xlu2 %946, %v1205_v11   ;;  %602 = vperm.xlu1 %945, %v1205_v11   ;;  %v357_v16 = vadd.f32 %v353_v33, %v332_v34 }
  0xc7   : > { %v1313_v24 = vpop.permute.xlu0 %490 }
  0xc8   : > { %v384_v25 = vadd.f32 %v380_v42, %v1280_v50  ;;  %v1316_v26 = vpop.permute.xlu2 %436  ;;  %v382_v39 = vadd.f32 %v378_v41, %v357_v16 }
  0xc9   : > { %v452_v23 = vmul.f32 %v451_v44, %v1316_v26 }
  0xca   : > { %v409_v40 = vadd.f32 %v405_v35, %v384_v25 }
  0xce   : > { %948 = vset.pattern.permute.xlu2 %v1064_v45  ;;  %947 = vset.pattern.permute.xlu1 %v1065_v46  ;;  %v395_v47 = vpop.permute.xlu1 %394 }
  0xcf   : > { %v404_v49 = vmul.f32 %v401_v9, %v395_v47  ;;  %623 = vperm.xlu2 %948, %v1205_v11   ;;  %616 = vperm.xlu1 %947, %v1205_v11  }
  0xd0   : > { %v391_v50 = vpop.permute.xlu0 %390  ;;  %v445_v51 = vpop.permute.xlu2 %444 }
  0xd1   : > { %v408_v54 = vadd.f32 %v404_v49, %v383_v7  ;;  %v403_v55 = vmul.f32 %v401_v9, %v391_v50  ;;  %v454_v56 = vmul.f32 %v451_v44, %v445_v51  ;;  %v1069_v7 = vmov 23  }
  0xd3   : > { %v407_v58 = vadd.f32 %v403_v55, %v382_v39  ;;  %v433_v20 = vadd.f32 %v429_v48, %v408_v54 }
  0xd5   : > { %v432_v59 = vadd.f32 %v428_v53, %v407_v58  ;;  %v458_v60 = vadd.f32 %v454_v56, %v433_v20 }
  0xd7   : > { %951 = vset.pattern.permute.xlu2 %v1066_v61  ;;  %950 = vset.pattern.permute.xlu1 %v1067_v62  ;;  %v412_v52 = vpop.permute.xlu1 %411 }
  0xd8   : > { %v427_v63 = vmul.f32 %v426_v43, %v412_v52  ;;  %644 = vperm.xlu2 %951, %v1205_v11   ;;  %637 = vperm.xlu1 %950, %v1205_v11   ;;  %v526_v51 = vpop.permute.xlu0 %525 }
  0xd9   : > { %v468_v1 = vpop.permute.xlu2 %467 }
  0xda   : > { %v431_v0 = vadd.f32 %v427_v63, %v406_v32 }
  0xdc   : > { %v456_v29 = vadd.f32 %v452_v23, %v431_v0 }
  0xdf   : > { %v424_v2 = vpop.permute.xlu1 %423 }
  0xe0   : > { %v430_v5 = vmul.f32 %v426_v43, %v424_v2  ;;  %953 = vset.pattern.permute.xlu2 %v1068_v6  ;;  %952 = vset.pattern.permute.xlu1 %v1069_v7 }
  0xe1   : > { %658 = vperm.xlu2 %953, %v1205_v11   ;;  %651 = vperm.xlu1 %952, %v1205_v11   ;;  %v478_v10 = vpop.permute.xlu2 %477 }
  0xe2   : > { %v434_v8 = vadd.f32 %v430_v5, %v409_v40  ;;  %v561_v5 = vpop.permute.xlu0 %560 }
  0xe4   : > { %v459_v9 = vadd.f32 %v455_v4, %v434_v8 }
  0xe6   : > { %v1328_v12 = vadd.f32 %v478_v10, %v459_v9 }
  0xe8   : > { %v441_v13 = vpop.permute.xlu1 %440 }
  0xe9   : > { %v453_v15 = vmul.f32 %v451_v44, %v441_v13  ;;  %956 = vset.pattern.permute.xlu2 %v1070_v17  ;;  %955 = vset.pattern.permute.xlu1 %v1071_v18 }
  0xea   : > { %679 = vperm.xlu2 %956, %v1205_v11   ;;  %672 = vperm.xlu1 %955, %v1205_v11   ;;  %v505_v21 = vpop.permute.xlu2 %504 }
  0xeb   : > { %v457_v57 = vadd.f32 %v453_v15, %v432_v59 }
  0xed   : > { %v481_v47 = vadd.f32 %v468_v1, %v457_v57 }
  0xef   : > { %v485_v55 = vmax.f32 %v481_v47, 0.0 }
  0xf1   : > { %v463_v14 = vpop.permute.xlu1 %462  ;;  %v556_v62 = vperm.slane %v485_v55, 1  ;;  %v563_v0 = vperm.slane %v485_v55, 2  ;;  %v570_v9 = vperm.slane %v485_v55, 3  ;;  %v577_v13 = vperm.slane %v485_v55, 4 }
  0xf2   : > { %958 = vset.pattern.permute.xlu2 %v1072_v19  ;;  %957 = vset.pattern.permute.xlu1 %v1073_v22  ;;  %v480_v32 = vadd.f32 %v463_v14, %v456_v29  ;;  %v584_v19 = vperm.slane %v485_v55, 5  ;;  %v598_v23 = vperm.slane %v485_v55, 7 }
  0xf3   : > { %693 = vperm.xlu2 %958, %v1205_v11   ;;  %686 = vperm.xlu1 %957, %v1205_v11   ;;  %v519_v34 = vpop.permute.xlu2 %518  ;;  %v564_v7 = vmul.f32 %v563_v0, %v561_v5 }
  0xf4   : > { %v484_v33 = vmax.f32 %v480_v32, 0.0 }
  0xf6   : > { %v493_v36 = vperm.slane %v484_v33, 0  ;;  %v500_v37 = vperm.slane %v484_v33, 1  ;;  %v507_v42 = vperm.slane %v484_v33, 2  ;;  %v514_v25 = vperm.slane %v484_v33, 3 }
  0xf7   : > { %v528_v46 = vperm.slane %v484_v33, 5  ;;  %v535_v50 = vperm.slane %v484_v33, 6  ;;  %v542_v58 = vperm.slane %v484_v33, 7 }
  0xf8   : > { %v494_v41 = vmul.f32 %v493_v36, %v1313_v24  ;;  %v508_v40 = vmul.f32 %v507_v42, %v505_v21  ;;  %v591_v21 = vperm.slane %v485_v55, 6 }
  0xf9   : > { %v473_v27 = vpop.permute.xlu1 %472  ;;  %v529_v54 = vmul.f32 %v528_v46, %v526_v51 }
  0xfa   : > { %v1338_v30 = vadd.f32 %v473_v27, %v458_v60  ;;  %v549_v60 = vperm.slane %v485_v55, 0 }
  0xfb   : > { %960 = vset.pattern.permute.xlu1 %v1074_v31  ;;  %961 = vset.pattern.permute.xlu2 %v1044_v3  ;;  %v521_v3 = vperm.slane %v484_v33, 4  ;;  %v596_v31 = vpop.permute.xlu0 %595 }
  0xfc   : > { %707 = vperm.xlu1 %960, %v1205_v11   ;;  %715 = vperm.xlu2 %961, %v254_v28   ;;  %v540_v26 = vpop.permute.xlu2 %539  ;;  %v486_v32 = vmax.f32 %v1338_v30, 0.0 }
  0xfd   : > { %v522_v11 = vmul.f32 %v521_v3, %v519_v34  ;;  %v543_v59 = vmul.f32 %v542_v58, %v540_v26  ;;  %v599_v34 = vmul.f32 %v598_v23, %v596_v31 }
  0xfe   : > { %v626_v3 = vperm.slane %v486_v32, 3  ;;  %v640_v51 = vperm.slane %v486_v32, 5 }
 0x102   : > { %v498_v35 = vpop.permute.xlu1 %497 }
 0x103   : > { %v501_v38 = vmul.f32 %v500_v37, %v498_v35  ;;  %v605_v37 = vperm.slane %v486_v32, 0  ;;  %v631_v30 = vpop.permute.xlu0 %630 }
 0x105   : > { %v502_v16 = vadd.f32 %v501_v38, %v494_v41  ;;  %v554_v53 = vpop.permute.xlu2 %553  ;;  %v612_v41 = vperm.slane %v486_v32, 1 }
 0x106   : > { %v557_v1 = vmul.f32 %v556_v62, %v554_v53 }
 0x107   : > { %v509_v44 = vadd.f32 %v508_v40, %v502_v16  ;;  %v619_v40 = vperm.slane %v486_v32, 2 }
 0x10b   : > { %v512_v39 = vpop.permute.xlu1 %511 }
 0x10c   : > { %v515_v43 = vmul.f32 %v514_v25, %v512_v39 }
 0x10e   : > { %v516_v45 = vadd.f32 %v515_v43, %v509_v44  ;;  %v575_v2 = vpop.permute.xlu2 %574 }
 0x10f   : > { %v578_v17 = vmul.f32 %v577_v13, %v575_v2 }
 0x110   : > { %v523_v48 = vadd.f32 %v522_v11, %v516_v45  ;;  %v633_v45 = vperm.slane %v486_v32, 4 }
 0x112   : > { %v530_v56 = vadd.f32 %v529_v54, %v523_v48  ;;  %v634_v48 = vmul.f32 %v633_v45, %v631_v30  ;;  %v647_v54 = vperm.slane %v486_v32, 6 }
 0x114   : > { %v533_v49 = vpop.permute.xlu1 %532 }
 0x115   : > { %v536_v24 = vmul.f32 %v535_v50, %v533_v49 }
 0x117   : > { %v537_v20 = vadd.f32 %v536_v24, %v530_v56  ;;  %v589_v18 = vpop.permute.xlu2 %588 }
 0x118   : > { %v592_v28 = vmul.f32 %v591_v21, %v589_v18 }
 0x119   : > { %v544_v52 = vadd.f32 %v543_v59, %v537_v20  ;;  %v487_v20 = vmax.f32 %v1328_v12, 0.0 }
 0x11b   : > { %v661_v62 = vperm.slane %v487_v20, 0  ;;  %v668_v0 = vperm.slane %v487_v20, 1  ;;  %v689_v18 = vperm.slane %v487_v20, 4  ;;  %v703_v21 = vperm.slane %v487_v20, 6 }
 0x11d   : > { %v547_v61 = vpop.permute.xlu1 %546 }
 0x11e   : > { %v550_v63 = vmul.f32 %v549_v60, %v547_v61  ;;  %v654_v60 = vperm.slane %v486_v32, 7 }
 0x120   : > { %v551_v4 = vadd.f32 %v550_v63, %v544_v52  ;;  %v610_v33 = vpop.permute.xlu2 %609  ;;  %v666_v63 = vpop.permute.xlu0 %665 }
 0x121   : > { %v613_v16 = vmul.f32 %v612_v41, %v610_v33  ;;  %v710_v33 = vperm.slane %v487_v20, 7 }
 0x122   : > { %v558_v6 = vadd.f32 %v557_v1, %v551_v4  ;;  %v669_v4 = vmul.f32 %v668_v0, %v666_v63 }
 0x124   : > { %v565_v8 = vadd.f32 %v564_v7, %v558_v6 }
 0x126   : > { %v568_v10 = vpop.permute.xlu1 %567 }
 0x127   : > { %v571_v15 = vmul.f32 %v570_v9, %v568_v10  ;;  %v682_v10 = vperm.slane %v487_v20, 3 }
 0x128   : > { %v701_v23 = vpop.permute.xlu0 %700 }
 0x129   : > { %v572_v57 = vadd.f32 %v571_v15, %v565_v8  ;;  %v624_v26 = vpop.permute.xlu2 %623  ;;  %v675_v8 = vperm.slane %v487_v20, 2 }
 0x12a   : > { %v627_v11 = vmul.f32 %v626_v3, %v624_v26 }
 0x12b   : > { %v579_v14 = vadd.f32 %v578_v17, %v572_v57 }
 0x12f   : > { %v582_v22 = vpop.permute.xlu1 %581 }
 0x130   : > { %v585_v27 = vmul.f32 %v584_v19, %v582_v22  ;;  %v696_v19 = vperm.slane %v487_v20, 5 }
 0x132   : > { %v586_v29 = vadd.f32 %v585_v27, %v579_v14  ;;  %v645_v49 = vpop.permute.xlu2 %644 }
 0x133   : > { %v648_v55 = vmul.f32 %v647_v54, %v645_v49 }
 0x134   : > { %v593_v35 = vadd.f32 %v592_v28, %v586_v29  ;;  %v704_v29 = vmul.f32 %v703_v21, %v701_v23 }
 0x136   : > { %v600_v36 = vadd.f32 %v599_v34, %v593_v35 }
 0x138   : > { %v603_v38 = vpop.permute.xlu1 %602 }
 0x139   : > { %v606_v42 = vmul.f32 %v605_v37, %v603_v38 }
 0x13b   : > { %v607_v25 = vadd.f32 %v606_v42, %v600_v36  ;;  %v659_v59 = vpop.permute.xlu2 %658 }
 0x13c   : > { %v662_v2 = vmul.f32 %v661_v62, %v659_v59 }
 0x13d   : > { %v614_v39 = vadd.f32 %v613_v16, %v607_v25 }
 0x141   : > { %v617_v43 = vpop.permute.xlu1 %616 }
 0x142   : > { %v620_v44 = vmul.f32 %v619_v40, %v617_v43 }
 0x144   : > { %v621_v46 = vadd.f32 %v620_v44, %v614_v39  ;;  %v680_v7 = vpop.permute.xlu2 %679 }
 0x145   : > { %v683_v15 = vmul.f32 %v682_v10, %v680_v7 }
 0x146   : > { %v628_v47 = vadd.f32 %v627_v11, %v621_v46 }
 0x148   : > { %v635_v50 = vadd.f32 %v634_v48, %v628_v47 }
 0x14a   : > { %v638_v53 = vpop.permute.xlu1 %637 }
 0x14b   : > { %v641_v24 = vmul.f32 %v640_v51, %v638_v53 }
 0x14d   : > { %v642_v56 = vadd.f32 %v641_v24, %v635_v50  ;;  %v694_v57 = vpop.permute.xlu2 %693 }
 0x14e   : > { %v697_v27 = vmul.f32 %v696_v19, %v694_v57 }
 0x14f   : > { %v649_v58 = vadd.f32 %v648_v55, %v642_v56 }
 0x153   : > { %v652_v61 = vpop.permute.xlu1 %651 }
 0x154   : > { %v655_v52 = vmul.f32 %v654_v60, %v652_v61 }
 0x156   : > { %v656_v1 = vadd.f32 %v655_v52, %v649_v58  ;;  %v716_v36 = vpop.permute.xlu2 %715 }
 0x158   : > { %v663_v5 = vadd.f32 %v662_v2, %v656_v1 }
 0x15a   : > { %v670_v6 = vadd.f32 %v669_v4, %v663_v5 }
 0x15c   : > { %v673_v9 = vpop.permute.xlu1 %672 }
 0x15d   : > { %v676_v13 = vmul.f32 %v675_v8, %v673_v9 }
 0x15f   : > { %v677_v12 = vadd.f32 %v676_v13, %v670_v6 }
 0x161   : > { %v684_v17 = vadd.f32 %v683_v15, %v677_v12 }
 0x165   : > { %v687_v14 = vpop.permute.xlu1 %686 }
 0x166   : > { %v690_v22 = vmul.f32 %v689_v18, %v687_v14 }
 0x168   : > { %v691_v28 = vadd.f32 %v690_v22, %v684_v17 }
 0x16a   : > { %v698_v31 = vadd.f32 %v697_v27, %v691_v28 }
 0x16c   : > { %v705_v32 = vadd.f32 %v704_v29, %v698_v31 }
 0x16e   : > { %v708_v34 = vpop.permute.xlu1 %707 }
 0x16f   : > { %v711_v35 = vmul.f32 %v710_v33, %v708_v34 }
 0x171   : > { %v712_v37 = vadd.f32 %v711_v35, %v705_v32 }
 0x173   : > { %v718_v38 = vadd.f32 %v716_v36, %v712_v37 }
 0x175   : > { %720 = vst.msk [vmem:[%s237_s8] sm:$0xff] %vm719_vm0, %v718_v38 }
 0x176   : > { %990 = shalt.err (!%p987_p5)
}
 0x177   : > { %820 = dma.vmem_to_hbm [thread:$0]  (%p1145_p4), %s736_s9, 128, %s738_s10, %s722_s21  }
 0x178 PF: > { %p826_p6 = scmp.ge.s32.totalorder %s1041_s23, 2  ;;  %s749_s17 = sand.u32 1, %s1021_s18  }
 0x179   : > { %s750_s25 = scalar_lea.sflag [#allocation3], %s749_s17 }
 0x17a   : > { %p823_p7 = pnand %p826_p6, %p1152_p8 }
 0x17c   : > { %p824_p9 = pneg %p823_p7 }
 0x17e   : > { %1016 = dma.done.wait (%p824_p9), %s750_s25, 128  }
 0x17f   : > { %1018 = vsyncadd (%p824_p9), %s750_s25, 4294967168  ;;  %s18_s23 = sadd.s32 1, %s1041_s23   ;;  %s1390_s18 = smov %s1025_s19 }
 0x180   : > { %p15_p10 = scmp.ge.s32.totalorder %s18_s23, 4   ;;  %s1391_s19 = smov %s1029_s20 }
 0x181   : > { %s1392_s20 = smov %s1158_s6  ;;  %s1393_s21 = smov %s1037_s22 }
 0x182   : > { %s1394_s22 = smov %s1396_s26  ;;  %17 = sbr.rel (!%p15_p10) target bundleno = 4 (0x4), region = 75 }
 0x187   :  { %756 = vsyncpa [#allocation3], 1 }
 0x188   :  { %758 = vsyncpa [#allocation3 + $0x1], 1 }

</bundles_post_ra>
